<compile_context>
chip_gen: v6e
topology: v6e:2x2x1
jax: 0.10.0
libtpu: 0.0.40
codegen_flags: <defaults>
</compile_context>

<pallas_src>
import jax
import jax.numpy as jnp
from jax.experimental import pallas as pl
from jax.experimental.pallas import tpu as pltpu


def exp_head_kernel(x_ref, w1_ref, b1_ref, w2_ref, b2_ref, out_ref):
    # x_ref: (TB, S, L) — mean over the trailing (lane) axis -> (TB, S)
    feat = jnp.mean(x_ref[...], axis=-1)
    # fc1: (TB, S) @ (S, Hid) + b1, then ReLU
    h = jnp.dot(feat, w1_ref[...], preferred_element_type=jnp.float32) + b1_ref[...]
    h = jnp.maximum(h, 0.0)
    # Dropout is the identity in eval mode.
    # fc2: (TB, Hid) @ (Hid, C) + b2
    out = jnp.dot(h, w2_ref[...], preferred_element_type=jnp.float32) + b2_ref[...]
    out_ref[...] = out.astype(out_ref.dtype)


def _choose_batch_tile(B, S, L, itemsize=4, budget_bytes=24 << 20):
    """Largest batch tile whose double-buffered x slab fits the VMEM budget."""
    per_row = max(1, S * L * itemsize)
    tb = budget_bytes // (2 * per_row)
    if tb >= B:
        return B                      # single block covering the whole batch
    return max(8, (tb // 8) * 8)      # keep the output block sublane-aligned


def exp_classifier_head(x, params):
    """x: (B, num_S, *spatial). Returns (B, num_classes) float32."""
    B, S = x.shape[0], x.shape[1]
    L = 1
    for d in x.shape[2:]:
        L *= d
    x_flat = jnp.asarray(x, jnp.float32).reshape(B, S, L)

    # Pre-transposed / reshaped params: all layout plumbing stays in the wrapper.
    w1 = jnp.asarray(params['fc1_w'], jnp.float32).T        # (S, Hid)
    b1 = jnp.asarray(params['fc1_b'], jnp.float32).reshape(1, -1)
    w2 = jnp.asarray(params['fc2_w'], jnp.float32).T        # (Hid, C)
    b2 = jnp.asarray(params['fc2_b'], jnp.float32).reshape(1, -1)
    hid = w1.shape[1]
    num_classes = w2.shape[1]

    tb = _choose_batch_tile(B, S, L)
    grid = (pl.cdiv(B, tb),)

    return pl.pallas_call(
        exp_head_kernel,
        out_shape=jax.ShapeDtypeStruct((B, num_classes), jnp.float32),
        grid_spec=pltpu.PrefetchScalarGridSpec(
            num_scalar_prefetch=0,
            grid=grid,
            in_specs=[
                pl.BlockSpec((tb, S, L), lambda i: (i, 0, 0)),         # x tile, pipelined over B
                pl.BlockSpec((S, hid), lambda i: (0, 0)),              # w1, resident
                pl.BlockSpec((1, hid), lambda i: (0, 0)),              # b1, resident
                pl.BlockSpec((hid, num_classes), lambda i: (0, 0)),    # w2, resident
                pl.BlockSpec((1, num_classes), lambda i: (0, 0)),      # b2, resident
            ],
            out_specs=pl.BlockSpec((tb, num_classes), lambda i: (i, 0)),
        ),
        compiler_params=pltpu.CompilerParams(
            dimension_semantics=("parallel",),
            vmem_limit_bytes=64 * 1024 * 1024,
        ),
    )(x_flat, w1, b1, w2, b2)


def ref_forward(x, params):
    """Pure-JAX reference mirroring the PyTorch eval forward."""
    B, S = x.shape[0], x.shape[1]
    feat = jnp.asarray(x, jnp.float32).reshape(B, S, -1).mean(-1)
    h = jnp.maximum(feat @ params['fc1_w'].T + params['fc1_b'], 0.0)
    return h @ params['fc2_w'].T + params['fc2_b']


if __name__ == "__main__":
    key = jax.random.PRNGKey(0)
    B, S, H, W = 2, 4, 16, 16           # batch, num_S, spatial dims (flattened by the module)
    HID, NUM_CLASSES = 32, 4
    ks = jax.random.split(key, 5)

    params = {
        'fc1_w': 0.1 * jax.random.normal(ks[0], (HID, S), jnp.float32),
        'fc1_b': 0.1 * jax.random.normal(ks[1], (HID,), jnp.float32),
        'fc2_w': 0.1 * jax.random.normal(ks[2], (NUM_CLASSES, HID), jnp.float32),
        'fc2_b': 0.1 * jax.random.normal(ks[3], (NUM_CLASSES,), jnp.float32),
    }
    x = jax.random.normal(ks[4], (B, S, H, W), jnp.float32)

    out = jax.block_until_ready(exp_classifier_head(x, params))
    ref = ref_forward(x, params)
    assert out.shape == (B, NUM_CLASSES), out.shape
    assert jnp.allclose(out, ref, rtol=1e-4, atol=1e-5), (out, ref)
    print("KERNEL_OK")
</pallas_src>

<mosaic_0001>
module attributes {stable_mosaic.version = 11 : i64} {
  func.func @exp_head_kernel(%arg0: i32, %arg1: memref<2x4x256xf32, #tpu.memory_space<vmem>>, %arg2: memref<4x32xf32, #tpu.memory_space<vmem>>, %arg3: memref<1x32xf32, #tpu.memory_space<vmem>>, %arg4: memref<32x4xf32, #tpu.memory_space<vmem>>, %arg5: memref<1x4xf32, #tpu.memory_space<vmem>>, %arg6: memref<2x4xf32, #tpu.memory_space<vmem>>) attributes {dimension_semantics = [#tpu.dimension_semantics<parallel>], iteration_bounds = array<i64: 1>, scalar_prefetch = 0 : i64, scratch_operands = 0 : i64, tpu.core_type = #tpu.core_type<tc>, window_params = [{transform_indices = @transform_0, window_bounds = array<i64: 2, 4, 256>}, {pipeline_mode = #tpu.pipeline_mode<synchronous>, transform_indices = @transform_1, window_bounds = array<i64: 4, 32>}, {pipeline_mode = #tpu.pipeline_mode<synchronous>, transform_indices = @transform_2, window_bounds = array<i64: 1, 32>}, {pipeline_mode = #tpu.pipeline_mode<synchronous>, transform_indices = @transform_3, window_bounds = array<i64: 32, 4>}, {pipeline_mode = #tpu.pipeline_mode<synchronous>, transform_indices = @transform_4, window_bounds = array<i64: 1, 4>}, {transform_indices = @transform_5, window_bounds = array<i64: 2, 4>}]} {
    %c0 = arith.constant 0 : index
    %c0_0 = arith.constant 0 : index
    %c0_1 = arith.constant 0 : index
    %0 = vector.load %arg1[%c0, %c0_0, %c0_1] : memref<2x4x256xf32, #tpu.memory_space<vmem>>, vector<2x4x256xf32>
    %cst = arith.constant dense<0.000000e+00> : vector<2x4xf32>
    %1 = vector.multi_reduction <add>, %0, %cst [2] : vector<2x4x256xf32> to vector<2x4xf32>
    %cst_2 = arith.constant 2.560000e+02 : f32
    %2 = vector.broadcast %cst_2 : f32 to vector<2x4xf32>
    %3 = arith.divf %1, %2 : vector<2x4xf32>
    %c0_3 = arith.constant 0 : index
    %c0_4 = arith.constant 0 : index
    %4 = vector.load %arg2[%c0_3, %c0_4] : memref<4x32xf32, #tpu.memory_space<vmem>>, vector<4x32xf32>
    %cst_5 = arith.constant dense<0.000000e+00> : vector<2x32xf32>
    %5 = tpu.matmul %3, %4, %cst_5 {dimension_numbers = #tpu.dot_dimension_numbers<[1], [0], [0], [1], [0, 0, 1, 1], [], []>} : vector<2x4xf32>, vector<4x32xf32>, vector<2x32xf32> -> vector<2x32xf32>
    %c0_6 = arith.constant 0 : index
    %c0_7 = arith.constant 0 : index
    %6 = vector.load %arg3[%c0_6, %c0_7] : memref<1x32xf32, #tpu.memory_space<vmem>>, vector<1x32xf32>
    %7 = vector.broadcast %6 : vector<1x32xf32> to vector<2x32xf32>
    %8 = arith.addf %5, %7 : vector<2x32xf32>
    %cst_8 = arith.constant 0.000000e+00 : f32
    %9 = vector.broadcast %cst_8 : f32 to vector<2x32xf32>
    %10 = arith.maximumf %8, %9 : vector<2x32xf32>
    %c0_9 = arith.constant 0 : index
    %c0_10 = arith.constant 0 : index
    %11 = vector.load %arg4[%c0_9, %c0_10] : memref<32x4xf32, #tpu.memory_space<vmem>>, vector<32x4xf32>
    %cst_11 = arith.constant dense<0.000000e+00> : vector<2x4xf32>
    %12 = tpu.matmul %10, %11, %cst_11 {dimension_numbers = #tpu.dot_dimension_numbers<[1], [0], [0], [1], [0, 0, 1, 1], [], []>} : vector<2x32xf32>, vector<32x4xf32>, vector<2x4xf32> -> vector<2x4xf32>
    %c0_12 = arith.constant 0 : index
    %c0_13 = arith.constant 0 : index
    %13 = vector.load %arg5[%c0_12, %c0_13] : memref<1x4xf32, #tpu.memory_space<vmem>>, vector<1x4xf32>
    %14 = vector.broadcast %13 : vector<1x4xf32> to vector<2x4xf32>
    %15 = arith.addf %12, %14 : vector<2x4xf32>
    %c0_14 = arith.constant 0 : index
    %c0_15 = arith.constant 0 : index
    %16 = vector.load %arg6[%c0_14, %c0_15] : memref<2x4xf32, #tpu.memory_space<vmem>>, vector<2x4xf32>
    tpu.vector_store %arg6[%c0_14, %c0_15], %15 {strides = array<i32>} : memref<2x4xf32, #tpu.memory_space<vmem>>, vector<2x4xf32>,
    return
  }
  func.func @transform_0(%arg0: i32) -> (i32, i32, i32) {
    %c0_i32 = arith.constant 0 : i32
    %c0_i32_0 = arith.constant 0 : i32
    %c0_i32_1 = arith.constant 0 : i32
    return %arg0, %c0_i32, %c0_i32_0 : i32, i32, i32
  }
  func.func @transform_1(%arg0: i32) -> (i32, i32) {
    %c0_i32 = arith.constant 0 : i32
    %c0_i32_0 = arith.constant 0 : i32
    %c0_i32_1 = arith.constant 0 : i32
    return %c0_i32, %c0_i32_0 : i32, i32
  }
  func.func @transform_2(%arg0: i32) -> (i32, i32) {
    %c0_i32 = arith.constant 0 : i32
    %c0_i32_0 = arith.constant 0 : i32
    %c0_i32_1 = arith.constant 0 : i32
    return %c0_i32, %c0_i32_0 : i32, i32
  }
  func.func @transform_3(%arg0: i32) -> (i32, i32) {
    %c0_i32 = arith.constant 0 : i32
    %c0_i32_0 = arith.constant 0 : i32
    %c0_i32_1 = arith.constant 0 : i32
    return %c0_i32, %c0_i32_0 : i32, i32
  }
  func.func @transform_4(%arg0: i32) -> (i32, i32) {
    %c0_i32 = arith.constant 0 : i32
    %c0_i32_0 = arith.constant 0 : i32
    %c0_i32_1 = arith.constant 0 : i32
    return %c0_i32, %c0_i32_0 : i32, i32
  }
  func.func @transform_5(%arg0: i32) -> (i32, i32) {
    %c0_i32 = arith.constant 0 : i32
    %c0_i32_0 = arith.constant 0 : i32
    return %arg0, %c0_i32 : i32, i32
  }
}

</mosaic_0001>

<bundles_post_ra>
// kernel: tpu_custom_call.1
= control target key start
LH: loop header
LB: loop body
LE: loop exit
PB: predicated region body
PF: predicated region fallthrough
CT: control target
= control target key end

     0   :  { %vm29_vm0 = vcmask 1043456   ;;  %s366_s0 = inlined_call_operand.vmem [shape: f32[2,4,256], index: 0, kind: input, shape index: {}]   ;;  %s367_s1 = inlined_call_operand.vmem [shape: f32[4,32], index: 1, kind: input, shape index: {}]   ;;  %s368_s2 = inlined_call_operand.vmem [shape: f32[1,32], index: 2, kind: input, shape index: {}]   ;;  %s369_s3 = inlined_call_operand.vmem [shape: f32[32,4], index: 3, kind: input, shape index: {}]   ;;  %s370_s4 = inlined_call_operand.vmem [shape: f32[1,4], index: 4, kind: input, shape index: {}]   ;;  %s371_s5 = inlined_call_operand.hbm [shape: f32[2,4], index: 5, kind: output, shape index: {}]  }
   0x1   :  { %v21_v0 = vld [vmem:[%s366_s0] sm:$0xff]  ;;  %v22_v1 = vld [vmem:[%s366_s0 + $0x8] sm:$0xff] }
   0x2   :  { %10 = vsyncpa [#allocation3], 0  ;;  %v25_v2 = vcombine.high %v21_v0, %v21_v0  ;;  %v30_v3 = vsel %vm29_vm0, %v21_v0, 0.0  ;;  %v26_v4 = vcombine.high %v22_v1, %v22_v1  ;;  %v35_v6 = vsel %vm29_vm0, %v22_v1, 0.0  ;;  %v43_v10 = vld [vmem:[%s367_s1] sm:$0xf] }
   0x3   :  { %v298_v11 = vmov 0.0   ;;  %vm299_vm1 = vmmov 0   ;;  %v145_v12 = vld [vmem:[%s369_s3 + $0x18] sm:$0xff]  ;;  %v53_v13 = vlaneseq  ;;  %vm63_vm2 = vcmask 1041409   ;;  %v144_v24 = vld [vmem:[%s369_s3 + $0x10] sm:$0xff]  ;;  %v143_v25 = vld [vmem:[%s369_s3 + $0x8] sm:$0xff] }
   0x4   :  { %v31_v5 = vsel %vm29_vm0, %v25_v2, 0.0  ;;  %v36_v7 = vsel %vm29_vm0, %v26_v4, 0.0  ;;  %255 = vmatprep.subr.mxu0 %v298_v11  ;;  %257 = vmatprep.mubr.msk.f32.mxu0 %vm299_vm1, %v298_v11  ;;  %vm65_vm3 = vcmask 31744   ;;  %v142_v26 = vld [vmem:[%s369_s3] sm:$0xff]  ;;  %vm153_vm4 = vcmask 261120   ;;  %s300_s9 = smov [#allocation2]  }
   0x5   :  { %v32_v8 = vadd.f32 %v31_v5, %v30_v3  ;;  %v37_v9 = vadd.f32 %v36_v7, %v35_v6  ;;  %256 = vmatpush3.msk.msra.mxu0 %vm29_vm0, %v43_v10  ;;  %260 = vmatprep.subr.mxu1 %v298_v11  ;;  %v54_v14 = vand.u32 127, %v53_v13  ;;  %v56_v15 = vshrl.u32 %v53_v13, 7  ;;  %v243_v27 = vld [vmem:[%s368_s2] ss:$0 sm:$0xff]  ;;  %s235_s10 = sshll.u32 %s300_s9, 4  ;;  %s236_s10 = int_to_ptr.vmem [resolvable:$true] %s235_s10 }
   0x6   :  { %268 = vmatprep.mubr.msk.f32.mxu1 %vm299_vm1, %v298_v11  ;;  %261 = vmatpush3.msra.mxu1 %v145_v12  ;;  %v246_v32 = vld [vmem:[%s370_s4] ss:$0 sm:$0xff]  ;;  %vm227_vm5 = vcmask 25600   ;;  %s276_s3 = scalar_lea.vmem %s236_s10, 32  ;;  %p281_p1 = scmp.lt.s32.totalorder %s236_s10, %s236_s10 }
   0x7   :  { %33 = vadd.xlane.f32.xlu0 %v32_v8  ;;  %262 = vmatprep.subr.mxu1 %v298_v11  ;;  %v57_v17 = vsub.s32 %v54_v14, %v56_v15  ;;  %p277_p0 = scmp.ne.s32.totalorder %s236_s10, %s276_s3  ;;  %p282_p2 = scmp.lt.s32.totalorder %s276_s3, %s276_s3 }
   0x8   :  { %263 = vmatpush3.msra.mxu1 %v144_v24 }
   0x9   :  { %264 = vmatprep.subr.mxu1 %v298_v11  ;;  %p283_p3 = por %p282_p2, %p281_p1 }
   0xa   :  { %265 = vmatpush3.msra.mxu1 %v143_v25 }
   0xb   :  { %38 = vadd.xlane.f32.xlu0 %v37_v9  ;;  %266 = vmatprep.subr.mxu1 %v298_v11  ;;  %p284_p4 = pnand %p283_p3, %p277_p0 }
   0xc   :  { %267 = vmatpush3.msra.mxu1 %v142_v26 }
  0x90   :  { %v34_v16 = vpop.xlane.xlu0 %33 }
  0x91   :  { %v41_v18 = vmul.f32 0.00390625, %v34_v16 }
  0x93   :  { %v58_v21 = vrot.slane %v41_v18, %v57_v17 }
  0x94   :  { %v39_v19 = vpop.xlane.xlu0 %38 }
  0x95   :  { %v42_v20 = vmul.f32 0.00390625, %v39_v19 }
  0x97   :  { %v62_v22 = vrot.slane %v42_v20, %v57_v17 }
  0x99   :  { %v64_v23 = vsel %vm63_vm2, %v62_v22, %v58_v21 }
  0x9a   :  { %258 = vmatmul.mubr.msk.f32.vlgmr.msra.gmra.mxu0 %vm65_vm3, %v64_v23 }
 0x15a   :  { %v137_v28 = vpop.f32.mrf.mxu0 }
 0x15b   :  { %v138_v29 = vadd.f32 %v243_v27, %v137_v28 }
 0x15c   :  { %v259_v30 = vpop.f32.mrf.mxu0 }
 0x15d   :  { %v141_v31 = vmax.f32 %v138_v29, 0.0 }
 0x15f   :  { %269 = vmatmul.mubr.msk.f32.vlgmr.msra.gmra.mxu1 %vm153_vm4, %v141_v31 }
 0x21f   :  { %v223_v33 = vpop.f32.mrf.mxu1 }
 0x220   :  { %v224_v34 = vadd.f32 %v246_v32, %v223_v33 }
 0x221   :  { %v270_v35 = vpop.f32.mrf.mxu1 }
 0x222   :  { %228 = vst.msk [vmem:[#allocation2] sm:$0x3] %vm227_vm5, %v224_v34 }
 0x223   :  { %287 = shalt.err (!%p284_p4)
}
 0x224   :  { %238 = dma.vmem_to_hbm [thread:$0]  %s236_s10, 32, %s371_s5, [#allocation3]  }
 0x225   :  { %296 = dma.done.wait [#allocation3], 32  }
 0x226   :  { %297 = vsyncadd [#allocation3], 4294967264 }
 0x227   :  { %242 = vsyncpa [#allocation3], 1 }

</bundles_post_ra>
